<compile_context>
chip_gen: v5e
topology: v5e:2x2
jax: 0.10.0
libtpu: 0.0.40
codegen_flags: <defaults>
</compile_context>

<pallas_src>
import functools

import jax
import jax.numpy as jnp
from jax.experimental import pallas as pl
from jax.experimental.pallas import tpu as pltpu

_LANE = 128                              # class-axis padding target (lane width)
_SUBLANE = 8                             # f32 sublane
_VMEM_LIMIT_BYTES = 32 * 1024 * 1024     # scoped VMEM requested (safe on v5e/v6e/v7x)
_VMEM_TILE_BUDGET = 24 * 1024 * 1024     # tile math budget (headroom for Mosaic)


def _round_up(x, m):
    return ((x + m - 1) // m) * m


def _cdiv(a, b):
    return (a + b - 1) // b


# --------------------------------------------------------------------------
# Kernel
# --------------------------------------------------------------------------
def _svc_forward_kernel(x_ref, w_ref, b_ref, o_ref, acc_ref, *,
                        f_valid, tk, mask_features):
    """scores = x @ W_eff + b_eff ; softmax over the lane-padded class axis.

    Grid = (batch_tiles, feature_tiles). The feature axis (innermost,
    "arbitrary") accumulates into a f32 VMEM scratch; bias + softmax run once
    on the last feature step. The StandardScaler is already folded into W/b.
    """
    k = pl.program_id(1)

    @pl.when(k == 0)
    def _init():
        acc_ref[...] = jnp.zeros_like(acc_ref)

    x = x_ref[...]
    if mask_features:
        # Ragged last feature block: zero out-of-range columns so the
        # (zero-padded) weight rows never meet undefined activation data.
        col = jax.lax.broadcasted_iota(jnp.int32, x.shape, 1) + k * tk
        x = jnp.where(col < f_valid, x, 0.0)

    # bf16 operands -> single-pass MXU; accumulate in f32.
    acc_ref[...] += jnp.dot(x.astype(jnp.bfloat16), w_ref[...],
                            preferred_element_type=jnp.float32)

    @pl.when(k == pl.num_programs(1) - 1)
    def _finalize():
        scores = acc_ref[...] + b_ref[...]                 # f32 bias add
        m = jnp.max(scores, axis=-1, keepdims=True)
        e = jnp.exp(scores - m)
        denom = jnp.sum(e, axis=-1, keepdims=True)
        # Exact normalization (approx reciprocal only sums rows to ~1e-3).
        o_ref[...] = (e * (1.0 / denom)).astype(o_ref.dtype)


# --------------------------------------------------------------------------
# Tile selection (VMEM-budget-aware, generation-safe)
# --------------------------------------------------------------------------
def _choose_tk(F, nc_pad):
    """Feature-axis block: keep the whole axis in one block when it fits the
    VMEM budget at a reasonable (~512-row) batch tile, else K-tile."""
    target_rows = 512
    out_bytes = (2 * 4 + 4) * target_rows * nc_pad          # out dbl-buf + f32 acc
    per_feat = 2 * target_rows * 4 + 2 * nc_pad * 2         # x dbl-buf + W dbl-buf
    if out_bytes + per_feat * F <= _VMEM_TILE_BUDGET:
        return F
    tk = (_VMEM_TILE_BUDGET - out_bytes) // per_feat
    return int(max((tk // _LANE) * _LANE, _LANE))


def _choose_tn(N, tk, nc_pad):
    """Batch-axis tile under the VMEM budget (conservatively assumes W is
    double-buffered, so Buffered(1) only adds headroom)."""
    fixed = 2 * tk * nc_pad * 2 + 2 * nc_pad * 4             # W (bf16) + bias
    per_row = 2 * tk * 4 + 2 * nc_pad * 4 + nc_pad * 4       # x dbl + out dbl + acc
    tn = max((_VMEM_TILE_BUDGET - fixed) // per_row, _SUBLANE)
    tn = max((int(tn) // _SUBLANE) * _SUBLANE, _SUBLANE)
    if tn >= N:
        if N >= 256:
            # Split so both v7x TensorCores get a tile under ("parallel", ...).
            tn = _round_up(_cdiv(N, 2), _SUBLANE)
        else:
            tn = N        # one block == full batch dim: always layout-legal
    return int(tn)


# --------------------------------------------------------------------------
# One-time parameter folding (per fitted model, hoisted out of forward)
# --------------------------------------------------------------------------
def fold_svc_params(mean, scale, weights, intercept, *, input_chw):
    """Fold the StandardScaler into the linear SVC:  W_eff = W / scale,
    b_eff = b - W_eff @ mean; permute features from NHWC-flatten order (how
    the sklearn model was fitted) to NCHW-flatten order (so forward never
    transposes the activation); pre-transpose, lane-pad and bf16-cast W."""
    C, H, W = input_chw
    F = C * H * W
    n_classes = int(weights.shape[0])
    nc_pad = _round_up(max(n_classes, 1), _LANE)

    def nhwc_to_nchw(v):
        return v.astype(jnp.float32).reshape(H, W, C).transpose(2, 0, 1).reshape(F)

    mean_p = nhwc_to_nchw(mean)
    scale_p = nhwc_to_nchw(scale)
    w_p = (weights.astype(jnp.float32)
           .reshape(n_classes, H, W, C).transpose(0, 3, 1, 2).reshape(n_classes, F))

    inv_scale = jnp.where(scale_p == 0.0, 1.0, 1.0 / scale_p)   # sklearn zero-var guard
    w_eff = w_p * inv_scale[None, :]
    b_eff = intercept.astype(jnp.float32) - w_eff @ mean_p

    # Pre-transposed + lane-padded class axis (pad classes: zero weights and
    # -1e30 bias -> softmax probability exactly 0).
    w_t = jnp.zeros((F, nc_pad), jnp.float32).at[:, :n_classes].set(w_eff.T)
    b_t = jnp.full((1, nc_pad), -1e30, jnp.float32).at[0, :n_classes].set(b_eff)

    tk = _choose_tk(F, nc_pad)
    k_tiles = _cdiv(F, tk)
    f_pad = k_tiles * tk
    if f_pad != F:
        w_t = jnp.pad(w_t, ((0, f_pad - F), (0, 0)))   # zero rows, one-time

    return dict(
        w_t=jnp.asarray(w_t, jnp.bfloat16),   # bf16 operand for single-pass MXU
        b_t=b_t,
        chw=(C, H, W), F=F, f_pad=f_pad, tk=tk, k_tiles=k_tiles,
        n_classes=n_classes, nc_pad=nc_pad,
    )


# --------------------------------------------------------------------------
# Forward
# --------------------------------------------------------------------------
def _pallas_forward(x_flat, w_t, b_t, *, N, F, f_pad, tk, k_tiles, nc_pad, tn,
                    single_buffer_resident):
    def resident(shape):
        # Constant index_map -> never re-DMA'd; single-buffer it to halve the
        # resident VMEM footprint when the JAX version supports pipeline_mode.
        if single_buffer_resident:
            return pl.BlockSpec(shape, lambda i, k: (0, 0),
                                pipeline_mode=pl.Buffered(1))
        return pl.BlockSpec(shape, lambda i, k: (0, 0))

    if k_tiles == 1:
        w_spec = resident((tk, nc_pad))
    else:
        w_spec = pl.BlockSpec((tk, nc_pad), lambda i, k: (k, 0))
    b_spec = resident((1, nc_pad))

    kernel = functools.partial(_svc_forward_kernel, f_valid=F, tk=tk,
                               mask_features=(f_pad != F))

    cost = pl.CostEstimate(
        flops=2 * N * f_pad * nc_pad,
        transcendentals=N * nc_pad,
        bytes_accessed=N * F * 4 + f_pad * nc_pad * 2 + nc_pad * 4 + N * nc_pad * 4,
    )

    return pl.pallas_call(
        kernel,
        out_shape=jax.ShapeDtypeStruct((N, nc_pad), jnp.float32),
        grid=(_cdiv(N, tn), k_tiles),
        in_specs=[
            pl.BlockSpec((tn, tk), lambda i, k: (i, k)),   # activation tile (pipelined)
            w_spec,                                        # W_eff.T  (bf16)
            b_spec,                                        # b_eff    (f32)
        ],
        out_specs=pl.BlockSpec((tn, nc_pad), lambda i, k: (i, 0)),
        scratch_shapes=[pltpu.VMEM((tn, nc_pad), jnp.float32)],
        compiler_params=pltpu.CompilerParams(
            dimension_semantics=("parallel", "arbitrary"),
            vmem_limit_bytes=_VMEM_LIMIT_BYTES,
        ),
        cost_estimate=cost,
    )(x_flat, w_t, b_t)


def svc_forward(x_nchw, params):
    """Pallas implementation of SVCWrapper.forward for a fitted linear SVC."""
    N, C, H, W = x_nchw.shape
    assert (C, H, W) == params["chw"], "input CHW does not match the fitted model"
    F, f_pad, tk, k_tiles = params["F"], params["f_pad"], params["tk"], params["k_tiles"]
    nc_pad, n_classes = params["nc_pad"], params["n_classes"]

    # Flatten in native NCHW order: no transpose and no padded HBM copy of the
    # activation (ragged batch / feature tiles are handled by the grid, masked
    # output stores, and the in-kernel column mask).
    x_flat = x_nchw.reshape(N, F).astype(jnp.float32)

    tn = _choose_tn(N, tk, nc_pad)
    common = dict(N=N, F=F, f_pad=f_pad, tk=tk, k_tiles=k_tiles, nc_pad=nc_pad, tn=tn)
    try:
        out = _pallas_forward(x_flat, params["w_t"], params["b_t"],
                              single_buffer_resident=True, **common)
    except Exception:
        # pl.Buffered(1) single-buffering needs a recent JAX; fall back to the
        # default double buffering (numerically identical).
        out = _pallas_forward(x_flat, params["w_t"], params["b_t"],
                              single_buffer_resident=False, **common)
    return out[:, :n_classes]


def svc_wrapper_forward(x_nchw, mean, scale, weights, intercept):
    """Convenience one-shot API. Prefer fold_svc_params() once per fitted
    model + svc_forward() per batch (the folding is per-model work)."""
    params = fold_svc_params(mean, scale, weights, intercept,
                             input_chw=tuple(int(d) for d in x_nchw.shape[1:]))
    return svc_forward(x_nchw, params)


# --------------------------------------------------------------------------
# Pure-JAX reference mirroring the PyTorch/sklearn forward
# --------------------------------------------------------------------------
def _reference_forward(x_nchw, mean, scale, weights, intercept):
    N = x_nchw.shape[0]
    x = jnp.transpose(x_nchw, (0, 2, 3, 1)).reshape(N, -1)    # NHWC flatten
    xs = (x - mean[None, :]) / scale[None, :]                  # StandardScaler
    scores = xs @ weights.T + intercept[None, :]               # decision_function
    return jax.nn.softmax(scores, axis=1)                      # softmax


if __name__ == "__main__":
    # Small deterministic example consistent with the module's expected input.
    N, C, H, W = 2, 4, 16, 16
    F = C * H * W            # 1024 features after flattening
    n_classes = 8

    key = jax.random.PRNGKey(0)
    k_x, k_m, k_s, k_w, k_b = jax.random.split(key, 5)

    x = jax.random.normal(k_x, (N, C, H, W), dtype=jnp.float32)

    # Synthetic "fitted" parameters (scaler + linear SVM) in the NHWC-flatten
    # feature order that the original module uses.
    scaler_mean = 0.1 * jax.random.normal(k_m, (F,), dtype=jnp.float32)
    scaler_scale = 1.0 + 0.05 * jax.random.uniform(k_s, (F,), dtype=jnp.float32)
    svm_weights = 0.02 * jax.random.normal(k_w, (n_classes, F), dtype=jnp.float32)
    svm_intercept = 0.1 * jax.random.normal(k_b, (n_classes,), dtype=jnp.float32)

    # One-time per-fitted-model folding (hoisted out of the per-call path).
    params = fold_svc_params(scaler_mean, scaler_scale, svm_weights,
                             svm_intercept, input_chw=(C, H, W))

    probs = svc_forward(x, params)
    probs = jax.block_until_ready(probs)

    ref = _reference_forward(x, scaler_mean, scaler_scale,
                             svm_weights, svm_intercept)

    assert probs.shape == (N, n_classes)
    assert bool(jnp.all(jnp.isfinite(probs)))
    assert jnp.allclose(jnp.sum(probs, axis=1), 1.0, atol=1e-4)
    assert jnp.allclose(probs, ref, atol=2e-3, rtol=2e-3)

    print("KERNEL_OK")
</pallas_src>

<mosaic_0001>
module attributes {stable_mosaic.version = 11 : i64} {
  func.func @_svc_forward_kernel(%arg0: i32, %arg1: i32, %arg2: memref<2x1024xf32, #tpu.memory_space<vmem>>, %arg3: memref<1024x128xbf16, #tpu.memory_space<vmem>>, %arg4: memref<1x128xf32, #tpu.memory_space<vmem>>, %arg5: memref<2x128xf32, #tpu.memory_space<vmem>>, %arg6: memref<2x128xf32, #tpu.memory_space<vmem>>) attributes {dimension_semantics = [#tpu.dimension_semantics<parallel>, #tpu.dimension_semantics<arbitrary>], iteration_bounds = array<i64: 1, 1>, scalar_prefetch = 0 : i64, scratch_operands = 1 : i64, tpu.core_type = #tpu.core_type<tc>, window_params = [{transform_indices = @transform_0, window_bounds = array<i64: 2, 1024>}, {pipeline_mode = #tpu.pipeline_mode<synchronous>, transform_indices = @transform_1, window_bounds = array<i64: 1024, 128>}, {pipeline_mode = #tpu.pipeline_mode<synchronous>, transform_indices = @transform_2, window_bounds = array<i64: 1, 128>}, {transform_indices = @transform_3, window_bounds = array<i64: 2, 128>}]} {
    %c0_i32 = arith.constant 0 : i32
    %0 = arith.cmpi eq, %arg1, %c0_i32 : i32
    %1 = arith.extui %0 : i1 to i32
    %c0_i32_0 = arith.constant 0 : i32
    %2 = arith.cmpi ne, %1, %c0_i32_0 : i32
    scf.if %2 {
      %cst_10 = arith.constant 0.000000e+00 : f32
      %13 = vector.broadcast %cst_10 : f32 to vector<2x128xf32>
      %c0_11 = arith.constant 0 : index
      %c0_12 = arith.constant 0 : index
      %14 = vector.load %arg6[%c0_11, %c0_12] : memref<2x128xf32, #tpu.memory_space<vmem>>, vector<2x128xf32>
      tpu.vector_store %arg6[%c0_11, %c0_12], %13 {strides = array<i32>} : memref<2x128xf32, #tpu.memory_space<vmem>>, vector<2x128xf32>,
    } else {
    }
    %c0 = arith.constant 0 : index
    %c0_1 = arith.constant 0 : index
    %3 = vector.load %arg2[%c0, %c0_1] : memref<2x1024xf32, #tpu.memory_space<vmem>>, vector<2x1024xf32>
    %c0_2 = arith.constant 0 : index
    %c0_3 = arith.constant 0 : index
    %4 = vector.load %arg6[%c0_2, %c0_3] : memref<2x128xf32, #tpu.memory_space<vmem>>, vector<2x128xf32>
    %5 = arith.truncf %3 : vector<2x1024xf32> to vector<2x1024xbf16>
    %c0_4 = arith.constant 0 : index
    %c0_5 = arith.constant 0 : index
    %6 = vector.load %arg3[%c0_4, %c0_5] : memref<1024x128xbf16, #tpu.memory_space<vmem>>, vector<1024x128xbf16>
    %cst = arith.constant dense<0.000000e+00> : vector<2x128xf32>
    %7 = tpu.matmul %5, %6, %cst {dimension_numbers = #tpu.dot_dimension_numbers<[1], [0], [0], [1], [0, 0, 1, 1], [], []>} : vector<2x1024xbf16>, vector<1024x128xbf16>, vector<2x128xf32> -> vector<2x128xf32>
    %8 = arith.addf %4, %7 : vector<2x128xf32>
    %c0_6 = arith.constant 0 : index
    %c0_7 = arith.constant 0 : index
    %9 = vector.load %arg6[%c0_6, %c0_7] : memref<2x128xf32, #tpu.memory_space<vmem>>, vector<2x128xf32>
    tpu.vector_store %arg6[%c0_6, %c0_7], %8 {strides = array<i32>} : memref<2x128xf32, #tpu.memory_space<vmem>>, vector<2x128xf32>,
    %c0_i32_8 = arith.constant 0 : i32
    %10 = arith.cmpi eq, %arg1, %c0_i32_8 : i32
    %11 = arith.extui %10 : i1 to i32
    %c0_i32_9 = arith.constant 0 : i32
    %12 = arith.cmpi ne, %11, %c0_i32_9 : i32
    scf.if %12 {
      %c0_10 = arith.constant 0 : index
      %c0_11 = arith.constant 0 : index
      %13 = vector.load %arg6[%c0_10, %c0_11] : memref<2x128xf32, #tpu.memory_space<vmem>>, vector<2x128xf32>
      %c0_12 = arith.constant 0 : index
      %c0_13 = arith.constant 0 : index
      %14 = vector.load %arg4[%c0_12, %c0_13] : memref<1x128xf32, #tpu.memory_space<vmem>>, vector<1x128xf32>
      %15 = vector.broadcast %14 : vector<1x128xf32> to vector<2x128xf32>
      %16 = arith.addf %13, %15 : vector<2x128xf32>
      %cst_14 = arith.constant dense<0xFF800000> : vector<2xf32>
      %17 = vector.multi_reduction <maximumf>, %16, %cst_14 [1] : vector<2x128xf32> to vector<2xf32>
      %18 = vector.shape_cast %17 : vector<2xf32> to vector<2x1xf32>
      %19 = vector.broadcast %18 : vector<2x1xf32> to vector<2x128xf32>
      %20 = arith.subf %16, %19 : vector<2x128xf32>
      %21 = math.exp %20 : vector<2x128xf32>
      %cst_15 = arith.constant dense<0.000000e+00> : vector<2xf32>
      %22 = vector.multi_reduction <add>, %21, %cst_15 [1] : vector<2x128xf32> to vector<2xf32>
      %23 = vector.shape_cast %22 : vector<2xf32> to vector<2x1xf32>
      %cst_16 = arith.constant 1.000000e+00 : f32
      %24 = vector.broadcast %cst_16 : f32 to vector<2x1xf32>
      %25 = arith.divf %24, %23 : vector<2x1xf32>
      %26 = vector.broadcast %25 : vector<2x1xf32> to vector<2x128xf32>
      %27 = arith.mulf %21, %26 : vector<2x128xf32>
      %c0_17 = arith.constant 0 : index
      %c0_18 = arith.constant 0 : index
      %28 = vector.load %arg5[%c0_17, %c0_18] : memref<2x128xf32, #tpu.memory_space<vmem>>, vector<2x128xf32>
      tpu.vector_store %arg5[%c0_17, %c0_18], %27 {strides = array<i32>} : memref<2x128xf32, #tpu.memory_space<vmem>>, vector<2x128xf32>,
    } else {
    }
    return
  }
  func.func @transform_0(%arg0: i32, %arg1: i32) -> (i32, i32) {
    %c0_i32 = arith.constant 0 : i32
    return %arg0, %arg1 : i32, i32
  }
  func.func @transform_1(%arg0: i32, %arg1: i32) -> (i32, i32) {
    %c0_i32 = arith.constant 0 : i32
    %c0_i32_0 = arith.constant 0 : i32
    %c0_i32_1 = arith.constant 0 : i32
    return %c0_i32, %c0_i32_0 : i32, i32
  }
  func.func @transform_2(%arg0: i32, %arg1: i32) -> (i32, i32) {
    %c0_i32 = arith.constant 0 : i32
    %c0_i32_0 = arith.constant 0 : i32
    %c0_i32_1 = arith.constant 0 : i32
    return %c0_i32, %c0_i32_0 : i32, i32
  }
  func.func @transform_3(%arg0: i32, %arg1: i32) -> (i32, i32) {
    %c0_i32 = arith.constant 0 : i32
    %c0_i32_0 = arith.constant 0 : i32
    return %arg0, %c0_i32 : i32, i32
  }
}

module attributes {stable_mosaic.version = 11 : i64} {
  func.func @_svc_forward_kernel(%arg0: i32, %arg1: i32, %arg2: memref<2x1024xf32, #tpu.memory_space<vmem>>, %arg3: memref<1024x128xbf16, #tpu.memory_space<vmem>>, %arg4: memref<1x128xf32, #tpu.memory_space<vmem>>, %arg5: memref<2x128xf32, #tpu.memory_space<vmem>>, %arg6: memref<2x128xf32, #tpu.memory_space<vmem>>) attributes {dimension_semantics = [#tpu.dimension_semantics<parallel>, #tpu.dimension_semantics<arbitrary>], iteration_bounds = array<i64: 1, 1>, scalar_prefetch = 0 : i64, scratch_operands = 1 : i64, tpu.core_type = #tpu.core_type<tc>, window_params = [{transform_indices = @transform_0, window_bounds = array<i64: 2, 1024>}, {pipeline_mode = #tpu.pipeline_mode<synchronous>, transform_indices = @transform_1, window_bounds = array<i64: 1024, 128>}, {pipeline_mode = #tpu.pipeline_mode<synchronous>, transform_indices = @transform_2, window_bounds = array<i64: 1, 128>}, {transform_indices = @transform_3, window_bounds = array<i64: 2, 128>}]} {
    %c0_i32 = arith.constant 0 : i32
    %0 = arith.cmpi eq, %arg1, %c0_i32 : i32
    %1 = arith.extui %0 : i1 to i32
    %c0_i32_0 = arith.constant 0 : i32
    %2 = arith.cmpi ne, %1, %c0_i32_0 : i32
    scf.if %2 {
      %cst_10 = arith.constant 0.000000e+00 : f32
      %13 = vector.broadcast %cst_10 : f32 to vector<2x128xf32>
      %c0_11 = arith.constant 0 : index
      %c0_12 = arith.constant 0 : index
      %14 = vector.load %arg6[%c0_11, %c0_12] : memref<2x128xf32, #tpu.memory_space<vmem>>, vector<2x128xf32>
      tpu.vector_store %arg6[%c0_11, %c0_12], %13 {strides = array<i32>} : memref<2x128xf32, #tpu.memory_space<vmem>>, vector<2x128xf32>,
    } else {
    }
    %c0 = arith.constant 0 : index
    %c0_1 = arith.constant 0 : index
    %3 = vector.load %arg2[%c0, %c0_1] : memref<2x1024xf32, #tpu.memory_space<vmem>>, vector<2x1024xf32>
    %c0_2 = arith.constant 0 : index
    %c0_3 = arith.constant 0 : index
    %4 = vector.load %arg6[%c0_2, %c0_3] : memref<2x128xf32, #tpu.memory_space<vmem>>, vector<2x128xf32>
    %5 = arith.truncf %3 : vector<2x1024xf32> to vector<2x1024xbf16>
    %c0_4 = arith.constant 0 : index
    %c0_5 = arith.constant 0 : index
    %6 = vector.load %arg3[%c0_4, %c0_5] : memref<1024x128xbf16, #tpu.memory_space<vmem>>, vector<1024x128xbf16>
    %cst = arith.constant dense<0.000000e+00> : vector<2x128xf32>
    %7 = tpu.matmul %5, %6, %cst {dimension_numbers = #tpu.dot_dimension_numbers<[1], [0], [0], [1], [0, 0, 1, 1], [], []>} : vector<2x1024xbf16>, vector<1024x128xbf16>, vector<2x128xf32> -> vector<2x128xf32>
    %8 = arith.addf %4, %7 : vector<2x128xf32>
    %c0_6 = arith.constant 0 : index
    %c0_7 = arith.constant 0 : index
    %9 = vector.load %arg6[%c0_6, %c0_7] : memref<2x128xf32, #tpu.memory_space<vmem>>, vector<2x128xf32>
    tpu.vector_store %arg6[%c0_6, %c0_7], %8 {strides = array<i32>} : memref<2x128xf32, #tpu.memory_space<vmem>>, vector<2x128xf32>,
    %c0_i32_8 = arith.constant 0 : i32
    %10 = arith.cmpi eq, %arg1, %c0_i32_8 : i32
    %11 = arith.extui %10 : i1 to i32
    %c0_i32_9 = arith.constant 0 : i32
    %12 = arith.cmpi ne, %11, %c0_i32_9 : i32
    scf.if %12 {
      %c0_10 = arith.constant 0 : index
      %c0_11 = arith.constant 0 : index
      %13 = vector.load %arg6[%c0_10, %c0_11] : memref<2x128xf32, #tpu.memory_space<vmem>>, vector<2x128xf32>
      %c0_12 = arith.constant 0 : index
      %c0_13 = arith.constant 0 : index
      %14 = vector.load %arg4[%c0_12, %c0_13] : memref<1x128xf32, #tpu.memory_space<vmem>>, vector<1x128xf32>
      %15 = vector.broadcast %14 : vector<1x128xf32> to vector<2x128xf32>
      %16 = arith.addf %13, %15 : vector<2x128xf32>
      %cst_14 = arith.constant dense<0xFF800000> : vector<2xf32>
      %17 = vector.multi_reduction <maximumf>, %16, %cst_14 [1] : vector<2x128xf32> to vector<2xf32>
      %18 = vector.shape_cast %17 : vector<2xf32> to vector<2x1xf32>
      %19 = vector.broadcast %18 : vector<2x1xf32> to vector<2x128xf32>
      %20 = arith.subf %16, %19 : vector<2x128xf32>
      %21 = math.exp %20 : vector<2x128xf32>
      %cst_15 = arith.constant dense<0.000000e+00> : vector<2xf32>
      %22 = vector.multi_reduction <add>, %21, %cst_15 [1] : vector<2x128xf32> to vector<2xf32>
      %23 = vector.shape_cast %22 : vector<2xf32> to vector<2x1xf32>
      %cst_16 = arith.constant 1.000000e+00 : f32
      %24 = vector.broadcast %cst_16 : f32 to vector<2x1xf32>
      %25 = arith.divf %24, %23 : vector<2x1xf32>
      %26 = vector.broadcast %25 : vector<2x1xf32> to vector<2x128xf32>
      %27 = arith.mulf %21, %26 : vector<2x128xf32>
      %c0_17 = arith.constant 0 : index
      %c0_18 = arith.constant 0 : index
      %28 = vector.load %arg5[%c0_17, %c0_18] : memref<2x128xf32, #tpu.memory_space<vmem>>, vector<2x128xf32>
      tpu.vector_store %arg5[%c0_17, %c0_18], %27 {strides = array<i32>} : memref<2x128xf32, #tpu.memory_space<vmem>>, vector<2x128xf32>,
    } else {
    }
    return
  }
  func.func @transform_0(%arg0: i32, %arg1: i32) -> (i32, i32) {
    %c0_i32 = arith.constant 0 : i32
    return %arg0, %arg1 : i32, i32
  }
  func.func @transform_1(%arg0: i32, %arg1: i32) -> (i32, i32) {
    %c0_i32 = arith.constant 0 : i32
    %c0_i32_0 = arith.constant 0 : i32
    %c0_i32_1 = arith.constant 0 : i32
    return %c0_i32, %c0_i32_0 : i32, i32
  }
  func.func @transform_2(%arg0: i32, %arg1: i32) -> (i32, i32) {
    %c0_i32 = arith.constant 0 : i32
    %c0_i32_0 = arith.constant 0 : i32
    %c0_i32_1 = arith.constant 0 : i32
    return %c0_i32, %c0_i32_0 : i32, i32
  }
  func.func @transform_3(%arg0: i32, %arg1: i32) -> (i32, i32) {
    %c0_i32 = arith.constant 0 : i32
    %c0_i32_0 = arith.constant 0 : i32
    return %arg0, %c0_i32 : i32, i32
  }
}

</mosaic_0001>

<bundles_post_ra>
// kernel: tpu_custom_call.1
= control target key start
LH: loop header
LB: loop body
LE: loop exit
PB: predicated region body
PF: predicated region fallthrough
CT: control target
= control target key end

     0   :  { %8 = vsyncpa [#allocation4], 0  ;;  %s1201_s0 = inlined_call_operand.hbm [shape: f32[2,1024], index: 0, kind: input, shape index: {}]   ;;  %s1202_s1 = inlined_call_operand.hbm [shape: bf16[1024,128], index: 1, kind: input, shape index: {}]   ;;  %s1203_s2 = inlined_call_operand.vmem [shape: f32[1,128], index: 2, kind: input, shape index: {}]   ;;  %s1204_s3 = inlined_call_operand.hbm [shape: f32[2,128], index: 3, kind: output, shape index: {}]  }
   0x1   :  { %9 = vsyncpa [#allocation7], 0 }
   0x2   :  { %10 = vsyncpa [#allocation5], 0  ;;  %s16_s14 = sshll.u32 %s1201_s0, 4  ;;  %s1163_s15 = smov [#allocation3]   ;;  %s17_s14 = int_to_ptr.hbm [resolvable:$true] %s16_s14 }
   0x3   :  { %s18_s16 = sshll.u32 %s1163_s15, 4  ;;  %s26_s19 = sshll.u32 %s1202_s1, 4  ;;  %s19_s16 = int_to_ptr.vmem [resolvable:$true] %s18_s16  ;;  %s27_s19 = int_to_ptr.hbm [resolvable:$true] %s26_s19 }
   0x4   :  { %21 = dma.hbm_to_vmem [thread:$0]  %s17_s14, 256, %s19_s16, [#allocation4]  }
   0x5   :  { %s1164_s20 = smov [#allocation6]   ;;  %s1165_s22 = smov 64  }
   0x6   :  { %s28_s21 = sshll.u32 %s1164_s20, 4  ;;  %s1166_s23 = smov 4   ;;  %s29_s21 = int_to_ptr.vmem [resolvable:$true] %s28_s21 }
   0x7   :  { %34 = dma.hbm_to_vmem [thread:$0]  %s27_s19, 8192, %s29_s21, [#allocation7], %s1165_s22, %s1165_s22, %s1166_s23  }
   0x8   :  { %1157 = dma.done.wait [#allocation4], 256  }
   0x9   :  { %1158 = vsyncadd [#allocation4], 4294967040 }
   0xa   :  { %1159 = dma.done.wait [#allocation7], 8192  }
   0xb   :  { %1160 = vsyncadd [#allocation7], 4294959104  ;;  %v1017_v0 = vld [vmem:[#allocation6 + $0x38] sm:$0xff]  ;;  %v1016_v4 = vld [vmem:[#allocation6 + $0x30] sm:$0xff]  ;;  %vm709_vm0 = vcmask 1041408   ;;  %s743_s27 = sshll.u32 %s1204_s3, 4  ;;  %s744_s27 = int_to_ptr.hbm [resolvable:$true] %s743_s27 }
   0xc   :  { %v1025_v1 = vld [vmem:[#allocation6 + $0x78] sm:$0xff]  ;;  %594 = vmatpush.bf16.msra.mxu0 %v1017_v0  ;;  %v1024_v5 = vld [vmem:[#allocation6 + $0x70] sm:$0xff]  ;;  %v1015_v8 = vld [vmem:[#allocation6 + $0x28] sm:$0xff] }
   0xd   :  { %v1033_v2 = vld [vmem:[#allocation6 + $0xb8] sm:$0xff]  ;;  %607 = vmatpush.bf16.msra.mxu1 %v1025_v1  ;;  %v1032_v6 = vld [vmem:[#allocation6 + $0xb0] sm:$0xff]  ;;  %v1023_v9 = vld [vmem:[#allocation6 + $0x68] sm:$0xff] }
   0xe   :  { %v1041_v3 = vld [vmem:[#allocation6 + $0xf8] sm:$0xff]  ;;  %620 = vmatpush.bf16.msra.mxu2 %v1033_v2  ;;  %v1040_v7 = vld [vmem:[#allocation6 + $0xf0] sm:$0xff]  ;;  %v1031_v10 = vld [vmem:[#allocation6 + $0xa8] sm:$0xff] }
   0xf   :  { %633 = vmatpush.bf16.msra.mxu3 %v1041_v3  ;;  %v1039_v11 = vld [vmem:[#allocation6 + $0xe8] sm:$0xff]  ;;  %v1014_v12 = vld [vmem:[#allocation6 + $0x20] sm:$0xff]  ;;  %v50_v16 = vld [vmem:[#allocation3] sm:$0xff] }
  0x10   :  { %595 = vmatpush.bf16.msra.mxu0 %v1016_v4  ;;  %v1022_v13 = vld [vmem:[#allocation6 + $0x60] sm:$0xff]  ;;  %v1013_v17 = vld [vmem:[#allocation6 + $0x18] sm:$0xff]  ;;  %55 = vst [vmem:[#allocation1] ss:$4 sm:$0xff] %v50_v16  ;;  %v1012_v21 = vld [vmem:[#allocation6 + $0x10] sm:$0xff] }
  0x11   :  { %608 = vmatpush.bf16.msra.mxu1 %v1024_v5  ;;  %v1030_v14 = vld [vmem:[#allocation6 + $0xa0] sm:$0xff]  ;;  %v1021_v18 = vld [vmem:[#allocation6 + $0x58] sm:$0xff]  ;;  %v1020_v22 = vld [vmem:[#allocation6 + $0x50] sm:$0xff] }
  0x12   :  { %621 = vmatpush.bf16.msra.mxu2 %v1032_v6  ;;  %v1038_v15 = vld [vmem:[#allocation6 + $0xe0] sm:$0xff]  ;;  %v1029_v19 = vld [vmem:[#allocation6 + $0x98] sm:$0xff]  ;;  %v1028_v23 = vld [vmem:[#allocation6 + $0x90] sm:$0xff] }
  0x13   :  { %634 = vmatpush.bf16.msra.mxu3 %v1040_v7  ;;  %v1037_v20 = vld [vmem:[#allocation6 + $0xd8] sm:$0xff]  ;;  %v1036_v24 = vld [vmem:[#allocation6 + $0xd0] sm:$0xff]  ;;  %v1011_v25 = vld [vmem:[#allocation6 + $0x8] sm:$0xff] }
  0x14   :  { %596 = vmatpush.bf16.msra.mxu0 %v1015_v8  ;;  %v1019_v26 = vld [vmem:[#allocation6 + $0x48] sm:$0xff]  ;;  %v51_v29 = vld [vmem:[#allocation3 + $0x8] sm:$0xff]  ;;  %v1010_v30 = vld [vmem:[#allocation6] sm:$0xff] }
  0x15   :  { %609 = vmatpush.bf16.msra.mxu1 %v1023_v9  ;;  %v1027_v27 = vld [vmem:[#allocation6 + $0x88] sm:$0xff]  ;;  %v1018_v31 = vld [vmem:[#allocation6 + $0x40] sm:$0xff]  ;;  %57 = vst [vmem:[#allocation1 + $0x20] ss:$4 sm:$0xff] %v51_v29  ;;  %v1049_v34 = vld [vmem:[#allocation6 + $0x138] sm:$0xff] }
  0x16   :  { %622 = vmatpush.bf16.msra.mxu2 %v1031_v10  ;;  %v1035_v28 = vld [vmem:[#allocation6 + $0xc8] sm:$0xff]  ;;  %v1026_v32 = vld [vmem:[#allocation6 + $0x80] sm:$0xff]  ;;  %v1057_v35 = vld [vmem:[#allocation6 + $0x178] sm:$0xff] }
  0x17   :  { %635 = vmatpush.bf16.msra.mxu3 %v1039_v11  ;;  %v1034_v33 = vld [vmem:[#allocation6 + $0xc0] sm:$0xff]  ;;  %v60_v36 = vld.sshfl [vmem:[#allocation1 + $0x10] sm:$0xff pattern:$0x73625140]  ;;  %v1047_v50 = vld [vmem:[#allocation6 + $0x128] sm:$0xff] }
  0x18   :  { %597 = vmatpush.bf16.msra.mxu0 %v1014_v12  ;;  %v58_v37 = vld.sshfl [vmem:[#allocation1] sm:$0xff pattern:$0x73625140]  ;;  %v61_v38 = vld.sshfl [vmem:[#allocation1 + $0x18] sm:$0xff pattern:$0x73625140]  ;;  %v76_v42 = vpack.c.bf16 %v60_v36, %v60_v36 }
  0x19   :  { %610 = vmatpush.bf16.msra.mxu1 %v1022_v13  ;;  %v59_v39 = vld.sshfl [vmem:[#allocation1 + $0x8] sm:$0xff pattern:$0x73625140]  ;;  %v1065_v40 = vld [vmem:[#allocation6 + $0x1b8] sm:$0xff]  ;;  %v74_v43 = vpack.c.bf16 %v58_v37, %v58_v37  ;;  %v77_v44 = vpack.c.bf16 %v61_v38, %v61_v38  ;;  %v1046_v54 = vld [vmem:[#allocation6 + $0x120] sm:$0xff] }
  0x1a   :  { %623 = vmatpush.bf16.msra.mxu2 %v1030_v14  ;;  %v1073_v41 = vld [vmem:[#allocation6 + $0x1f8] sm:$0xff]  ;;  %v75_v45 = vpack.c.bf16 %v59_v39, %v59_v39  ;;  %v1048_v46 = vld [vmem:[#allocation6 + $0x130] sm:$0xff]  ;;  %v1055_v51 = vld [vmem:[#allocation6 + $0x168] sm:$0xff] }
  0x1b   :  { %636 = vmatpush.bf16.msra.mxu3 %v1038_v15  ;;  %v1056_v47 = vld [vmem:[#allocation6 + $0x170] sm:$0xff]  ;;  %v1063_v52 = vld [vmem:[#allocation6 + $0x1a8] sm:$0xff]  ;;  %v1054_v55 = vld [vmem:[#allocation6 + $0x160] sm:$0xff] }
  0x1c   :  { %598 = vmatpush.bf16.msra.mxu0 %v1013_v17  ;;  %v1064_v48 = vld [vmem:[#allocation6 + $0x1b0] sm:$0xff]  ;;  %v1071_v53 = vld [vmem:[#allocation6 + $0x1e8] sm:$0xff]  ;;  %v1062_v56 = vld [vmem:[#allocation6 + $0x1a0] sm:$0xff] }
  0x1d   :  { %611 = vmatpush.bf16.msra.mxu1 %v1021_v18  ;;  %v1072_v49 = vld [vmem:[#allocation6 + $0x1f0] sm:$0xff]  ;;  %v1070_v57 = vld [vmem:[#allocation6 + $0x1e0] sm:$0xff]  ;;  %v1045_v58 = vld [vmem:[#allocation6 + $0x118] sm:$0xff] }
  0x1e   :  { %624 = vmatpush.bf16.msra.mxu2 %v1029_v19  ;;  %v1053_v59 = vld [vmem:[#allocation6 + $0x158] sm:$0xff]  ;;  %v1044_v62 = vld [vmem:[#allocation6 + $0x110] sm:$0xff]  ;;  %v1043_v2 = vld [vmem:[#allocation6 + $0x108] sm:$0xff] }
  0x1f   :  { %637 = vmatpush.bf16.msra.mxu3 %v1037_v20  ;;  %v1061_v60 = vld [vmem:[#allocation6 + $0x198] sm:$0xff]  ;;  %v1052_v63 = vld [vmem:[#allocation6 + $0x150] sm:$0xff]  ;;  %v1051_v3 = vld [vmem:[#allocation6 + $0x148] sm:$0xff]  ;;  %v1167_v20 = vmov 0.0  }
  0x20   :  { %599 = vmatpush.bf16.msra.mxu0 %v1012_v21  ;;  %v1069_v61 = vld [vmem:[#allocation6 + $0x1d8] sm:$0xff]  ;;  %v1060_v0 = vld [vmem:[#allocation6 + $0x190] sm:$0xff]  ;;  %v1059_v4 = vld [vmem:[#allocation6 + $0x188] sm:$0xff]  ;;  %49 = vst [vmem:[#allocation2] sm:$0x3] %v1167_v20 }
  0x21   :  { %612 = vmatpush.bf16.msra.mxu1 %v1020_v22  ;;  %v1068_v1 = vld [vmem:[#allocation6 + $0x1d0] sm:$0xff]  ;;  %v1067_v5 = vld [vmem:[#allocation6 + $0x1c8] sm:$0xff]  ;;  %v1042_v6 = vld [vmem:[#allocation6 + $0x100] sm:$0xff] }
  0x22   :  { %625 = vmatpush.bf16.msra.mxu2 %v1028_v23  ;;  %v1050_v7 = vld [vmem:[#allocation6 + $0x140] sm:$0xff]  ;;  %v63_v11 = vld.sshfl [vmem:[#allocation1 + $0x28] sm:$0xff pattern:$0x73625140] }
  0x23   :  { %638 = vmatpush.bf16.msra.mxu3 %v1036_v24  ;;  %v1058_v8 = vld [vmem:[#allocation6 + $0x180] sm:$0xff]  ;;  %v64_v12 = vld.sshfl [vmem:[#allocation1 + $0x30] sm:$0xff pattern:$0x73625140]  ;;  %v79_v15 = vpack.c.bf16 %v63_v11, %v63_v11 }
  0x24   :  { %600 = vmatpush.bf16.msra.mxu0 %v1011_v25  ;;  %v1066_v9 = vld [vmem:[#allocation6 + $0x1c0] sm:$0xff]  ;;  %v80_v16 = vpack.c.bf16 %v64_v12, %v64_v12 }
  0x25   :  { %613 = vmatpush.bf16.msra.mxu1 %v1019_v26  ;;  %v62_v10 = vld.sshfl [vmem:[#allocation1 + $0x20] sm:$0xff pattern:$0x73625140]  ;;  %v65_v13 = vld.sshfl [vmem:[#allocation1 + $0x38] sm:$0xff pattern:$0x73625140] }
  0x26   :  { %626 = vmatpush.bf16.msra.mxu2 %v1027_v27  ;;  %v78_v14 = vpack.c.bf16 %v62_v10, %v62_v10  ;;  %v81_v17 = vpack.c.bf16 %v65_v13, %v65_v13 }
  0x27   :  { %639 = vmatpush.bf16.msra.mxu3 %v1035_v28  ;;  %v52_v39 = vld [vmem:[#allocation2] sm:$0x3] }
  0x28   :  { %601 = vmatpush.bf16.msra.mxu0 %v1010_v30 }
  0x29   :  { %614 = vmatpush.bf16.msra.mxu1 %v1018_v31 }
  0x2a   :  { %627 = vmatpush.bf16.msra.mxu2 %v1026_v32 }
  0x2b   :  { %640 = vmatpush.bf16.msra.mxu3 %v1034_v33  ;;  %602 = vmatmul.bf16.vlgmr.msra.gmra.mxu0 %v74_v43 }
  0x2c   :  { %646 = vmatpush.bf16.msrb.mxu0 %v1049_v34  ;;  %615 = vmatmul.bf16.vlgmr.msra.gmra.mxu1 %v75_v45 }
  0x2d   :  { %659 = vmatpush.bf16.msrb.mxu1 %v1057_v35  ;;  %628 = vmatmul.bf16.vlgmr.msra.gmra.mxu2 %v76_v42 }
  0x2e   :  { %672 = vmatpush.bf16.msrb.mxu2 %v1065_v40  ;;  %641 = vmatmul.bf16.vlgmr.msra.gmra.mxu3 %v77_v44  ;;  %v1080_v44 = vld [vmem:[%s1203_s2] ss:$0 sm:$0xff]  ;;  %s1168_s2 = smov [#allocation8]  }
  0x2f   :  { %685 = vmatpush.bf16.msrb.mxu3 %v1073_v41  ;;  %s741_s24 = sshll.u32 %s1168_s2, 4  ;;  %s742_s24 = int_to_ptr.vmem [resolvable:$true] %s741_s24 }
  0x30   :  { %647 = vmatpush.bf16.msrb.mxu0 %v1048_v46 }
  0x31   :  { %660 = vmatpush.bf16.msrb.mxu1 %v1056_v47 }
  0x32   :  { %673 = vmatpush.bf16.msrb.mxu2 %v1064_v48 }
  0x33   :  { %686 = vmatpush.bf16.msrb.mxu3 %v1072_v49 }
  0x34   :  { %648 = vmatpush.bf16.msrb.mxu0 %v1047_v50 }
  0x35   :  { %661 = vmatpush.bf16.msrb.mxu1 %v1055_v51 }
  0x36   :  { %674 = vmatpush.bf16.msrb.mxu2 %v1063_v52 }
  0x37   :  { %687 = vmatpush.bf16.msrb.mxu3 %v1071_v53 }
  0x38   :  { %649 = vmatpush.bf16.msrb.mxu0 %v1046_v54 }
  0x39   :  { %662 = vmatpush.bf16.msrb.mxu1 %v1054_v55 }
  0x3a   :  { %675 = vmatpush.bf16.msrb.mxu2 %v1062_v56 }
  0x3b   :  { %688 = vmatpush.bf16.msrb.mxu3 %v1070_v57 }
  0x3c   :  { %650 = vmatpush.bf16.msrb.mxu0 %v1045_v58 }
  0x3d   :  { %663 = vmatpush.bf16.msrb.mxu1 %v1053_v59 }
  0x3e   :  { %676 = vmatpush.bf16.msrb.mxu2 %v1061_v60 }
  0x3f   :  { %689 = vmatpush.bf16.msrb.mxu3 %v1069_v61 }
  0x40   :  { %651 = vmatpush.bf16.msrb.mxu0 %v1044_v62 }
  0x41   :  { %664 = vmatpush.bf16.msrb.mxu1 %v1052_v63 }
  0x42   :  { %677 = vmatpush.bf16.msrb.mxu2 %v1060_v0 }
  0x43   :  { %690 = vmatpush.bf16.msrb.mxu3 %v1068_v1 }
  0x44   :  { %652 = vmatpush.bf16.msrb.mxu0 %v1043_v2 }
  0x45   :  { %665 = vmatpush.bf16.msrb.mxu1 %v1051_v3 }
  0x46   :  { %678 = vmatpush.bf16.msrb.mxu2 %v1059_v4 }
  0x47   :  { %691 = vmatpush.bf16.msrb.mxu3 %v1067_v5 }
  0x48   :  { %653 = vmatpush.bf16.msrb.mxu0 %v1042_v6 }
  0x49   :  { %666 = vmatpush.bf16.msrb.mxu1 %v1050_v7 }
  0x4a   :  { %679 = vmatpush.bf16.msrb.mxu2 %v1058_v8 }
  0x4b   :  { %692 = vmatpush.bf16.msrb.mxu3 %v1066_v9  ;;  %654 = vmatmul.bf16.vlgmr.msrb.gmra.mxu0 %v78_v14 }
  0x4c   :  { %667 = vmatmul.bf16.vlgmr.msrb.gmra.mxu1 %v79_v15 }
  0x4d   :  { %680 = vmatmul.bf16.vlgmr.msrb.gmra.mxu2 %v80_v16 }
  0x4e   :  { %693 = vmatmul.bf16.vlgmr.msrb.gmra.mxu3 %v81_v17 }
  0xa8   :  { %v603_v18 = vpop.f32.mrf.mxu0 }
  0xa9   :  { %v616_v19 = vpop.f32.mrf.mxu1 }
  0xaa   :  { %v617_v27 = vadd.f32 %v616_v19, %v603_v18 }
  0xb0   :  { %v629_v21 = vpop.f32.mrf.mxu2  ;;  %v605_v23 = vpop.f32.mrf.mxu0 }
  0xb1   :  { %v642_v22 = vpop.f32.mrf.mxu3  ;;  %v618_v24 = vpop.f32.mrf.mxu1  ;;  %v630_v28 = vadd.f32 %v629_v21, %v617_v27 }
  0xb3   :  { %v643_v29 = vadd.f32 %v642_v22, %v630_v28 }
  0xb8   :  { %v631_v25 = vpop.f32.mrf.mxu2 }
  0xb9   :  { %v644_v26 = vpop.f32.mrf.mxu3 }
  0xc8   :  { %v655_v30 = vpop.f32.mrf.mxu0 }
  0xc9   :  { %v668_v31 = vpop.f32.mrf.mxu1  ;;  %v656_v32 = vadd.f32 %v655_v30, %v643_v29 }
  0xcb   :  { %v669_v33 = vadd.f32 %v668_v31, %v656_v32 }
  0xd0   :  { %v681_v34 = vpop.f32.mrf.mxu2  ;;  %v657_v37 = vpop.f32.mrf.mxu0 }
  0xd1   :  { %v694_v35 = vpop.f32.mrf.mxu3  ;;  %v682_v36 = vadd.f32 %v681_v34, %v669_v33  ;;  %v670_v38 = vpop.f32.mrf.mxu1 }
  0xd3   :  { %v695_v40 = vadd.f32 %v694_v35, %v682_v36 }
  0xd5   :  { %v698_v41 = vadd.f32 %v695_v40, %v52_v39 }
  0xd7   :  { %699 = vst [vmem:[#allocation2] sm:$0x3] %v698_v41 }
  0xd8   :  { %v683_v42 = vpop.f32.mrf.mxu2 }
  0xd9   :  { %v696_v43 = vpop.f32.mrf.mxu3 }
  0xde   :  { %v703_v45 = vld [vmem:[#allocation2] sm:$0x3] }
  0xdf   :  { %v708_v46 = vadd.f32 %v1080_v44, %v703_v45 }
  0xe1   :  { %v710_v47 = vsel %vm709_vm0, %v708_v46, -inf }
  0xe2   :  { %711 = vmax.xlane.f32.xlu0 %v710_v47 }
 0x155   :  { %v712_v48 = vpop.xlane.xlu0 %711 }
 0x156   :  { %v713_v49 = vsub.f32 %v708_v46, %v712_v48 }
 0x158   :  { %v714_v50 = vmul.f32 1.442695, %v713_v49 }
 0x15a   :  { %1081 = vpow2.f32 %v714_v50 }
 0x160   :  { %v1082_v51 = vpop.eup %1081 }
 0x161   :  { %v716_v52 = vsel %vm709_vm0, %v1082_v51, 0.0 }
 0x162   :  { %717 = vadd.xlane.f32.xlu0 %v716_v52 }
 0x1d5   :  { %v718_v53 = vpop.xlane.xlu0 %717 }
 0x1d6   :  { %1083 = vrcp.f32 %v718_v53  ;;  %v730_v57 = vand.u32 2147483648, %v718_v53  ;;  %v728_v59 = vand.u32 2147483647, %v718_v53  ;;  %vm724_vm2 = vweird.f32 %v718_v53 }
 0x1d8   :  { %v731_v61 = vor.u32 1.1754944e-38, %v730_v57  ;;  %vm729_vm4 = vcmp.eq.f32.partialorder %v728_v59, 8.507059e+37 }
 0x1dc   :  { %v1084_v54 = vpop.eup %1083 }
 0x1dd   :  { %v720_v55 = vmul.f32 %v1084_v54, %v718_v53  ;;  %vm725_vm1 = vweird.f32 %v1084_v54 }
 0x1de   :  { %vm726_vm3 = vmor %vm724_vm2, %vm725_vm1 }
 0x1df   :  { %v721_v56 = vsub.f32 1.0, %v720_v55 }
 0x1e1   :  { %v722_v58 = vmul.f32 %v1084_v54, %v721_v56 }
 0x1e3   :  { %v723_v60 = vadd.f32 %v1084_v54, %v722_v58 }
 0x1e5   :  { %v727_v62 = vsel %vm726_vm3, %v1084_v54, %v723_v60 }
 0x1e6   :  { %v732_v63 = vsel %vm729_vm4, %v731_v61, %v727_v62 }
 0x1e7   :  { %v734_v0 = vmul.f32 %v1082_v51, %v732_v63 }
 0x1e9   :  { %735 = vst [vmem:[#allocation8] sm:$0x3] %v734_v0 }
 0x1ea   :  { %746 = dma.vmem_to_hbm [thread:$0]  %s742_s24, 32, %s744_s27, [#allocation5]  }
 0x1eb   :  { %1161 = dma.done.wait [#allocation5], 32  }
 0x1ec   :  { %1162 = vsyncadd [#allocation5], 4294967264 }
 0x1ed   :  { %751 = vsyncpa [#allocation4], 1 }
 0x1ee   :  { %752 = vsyncpa [#allocation7], 1 }
 0x1ef   :  { %753 = vsyncpa [#allocation5], 1 }

// kernel: tpu_custom_call.1
= control target key start
LH: loop header
LB: loop body
LE: loop exit
PB: predicated region body
PF: predicated region fallthrough
CT: control target
= control target key end

     0   :  { %8 = vsyncpa [#allocation4], 0  ;;  %s1201_s0 = inlined_call_operand.hbm [shape: f32[2,1024], index: 0, kind: input, shape index: {}]   ;;  %s1202_s1 = inlined_call_operand.hbm [shape: bf16[1024,128], index: 1, kind: input, shape index: {}]   ;;  %s1203_s2 = inlined_call_operand.vmem [shape: f32[1,128], index: 2, kind: input, shape index: {}]   ;;  %s1204_s3 = inlined_call_operand.hbm [shape: f32[2,128], index: 3, kind: output, shape index: {}]  }
   0x1   :  { %9 = vsyncpa [#allocation7], 0 }
   0x2   :  { %10 = vsyncpa [#allocation5], 0  ;;  %s16_s14 = sshll.u32 %s1201_s0, 4  ;;  %s1163_s15 = smov [#allocation3]   ;;  %s17_s14 = int_to_ptr.hbm [resolvable:$true] %s16_s14 }
   0x3   :  { %s18_s16 = sshll.u32 %s1163_s15, 4  ;;  %s26_s19 = sshll.u32 %s1202_s1, 4  ;;  %s19_s16 = int_to_ptr.vmem [resolvable:$true] %s18_s16  ;;  %s27_s19 = int_to_ptr.hbm [resolvable:$true] %s26_s19 }
   0x4   :  { %21 = dma.hbm_to_vmem [thread:$0]  %s17_s14, 256, %s19_s16, [#allocation4]  }
   0x5   :  { %s1164_s20 = smov [#allocation6]   ;;  %s1165_s22 = smov 64  }
   0x6   :  { %s28_s21 = sshll.u32 %s1164_s20, 4  ;;  %s1166_s23 = smov 4   ;;  %s29_s21 = int_to_ptr.vmem [resolvable:$true] %s28_s21 }
   0x7   :  { %34 = dma.hbm_to_vmem [thread:$0]  %s27_s19, 8192, %s29_s21, [#allocation7], %s1165_s22, %s1165_s22, %s1166_s23  }
   0x8   :  { %1157 = dma.done.wait [#allocation4], 256  }
   0x9   :  { %1158 = vsyncadd [#allocation4], 4294967040 }
   0xa   :  { %1159 = dma.done.wait [#allocation7], 8192  }
   0xb   :  { %1160 = vsyncadd [#allocation7], 4294959104  ;;  %v1017_v0 = vld [vmem:[#allocation6 + $0x38] sm:$0xff]  ;;  %v1016_v4 = vld [vmem:[#allocation6 + $0x30] sm:$0xff]  ;;  %vm709_vm0 = vcmask 1041408   ;;  %s743_s27 = sshll.u32 %s1204_s3, 4  ;;  %s744_s27 = int_to_ptr.hbm [resolvable:$true] %s743_s27 }
   0xc   :  { %v1025_v1 = vld [vmem:[#allocation6 + $0x78] sm:$0xff]  ;;  %594 = vmatpush.bf16.msra.mxu0 %v1017_v0  ;;  %v1024_v5 = vld [vmem:[#allocation6 + $0x70] sm:$0xff]  ;;  %v1015_v8 = vld [vmem:[#allocation6 + $0x28] sm:$0xff] }
   0xd   :  { %v1033_v2 = vld [vmem:[#allocation6 + $0xb8] sm:$0xff]  ;;  %607 = vmatpush.bf16.msra.mxu1 %v1025_v1  ;;  %v1032_v6 = vld [vmem:[#allocation6 + $0xb0] sm:$0xff]  ;;  %v1023_v9 = vld [vmem:[#allocation6 + $0x68] sm:$0xff] }
   0xe   :  { %v1041_v3 = vld [vmem:[#allocation6 + $0xf8] sm:$0xff]  ;;  %620 = vmatpush.bf16.msra.mxu2 %v1033_v2  ;;  %v1040_v7 = vld [vmem:[#allocation6 + $0xf0] sm:$0xff]  ;;  %v1031_v10 = vld [vmem:[#allocation6 + $0xa8] sm:$0xff] }
   0xf   :  { %633 = vmatpush.bf16.msra.mxu3 %v1041_v3  ;;  %v1039_v11 = vld [vmem:[#allocation6 + $0xe8] sm:$0xff]  ;;  %v1014_v12 = vld [vmem:[#allocation6 + $0x20] sm:$0xff]  ;;  %v50_v16 = vld [vmem:[#allocation3] sm:$0xff] }
  0x10   :  { %595 = vmatpush.bf16.msra.mxu0 %v1016_v4  ;;  %v1022_v13 = vld [vmem:[#allocation6 + $0x60] sm:$0xff]  ;;  %v1013_v17 = vld [vmem:[#allocation6 + $0x18] sm:$0xff]  ;;  %55 = vst [vmem:[#allocation1] ss:$4 sm:$0xff] %v50_v16  ;;  %v1012_v21 = vld [vmem:[#allocation6 + $0x10] sm:$0xff] }
  0x11   :  { %608 = vmatpush.bf16.msra.mxu1 %v1024_v5  ;;  %v1030_v14 = vld [vmem:[#allocation6 + $0xa0] sm:$0xff]  ;;  %v1021_v18 = vld [vmem:[#allocation6 + $0x58] sm:$0xff]  ;;  %v1020_v22 = vld [vmem:[#allocation6 + $0x50] sm:$0xff] }
  0x12   :  { %621 = vmatpush.bf16.msra.mxu2 %v1032_v6  ;;  %v1038_v15 = vld [vmem:[#allocation6 + $0xe0] sm:$0xff]  ;;  %v1029_v19 = vld [vmem:[#allocation6 + $0x98] sm:$0xff]  ;;  %v1028_v23 = vld [vmem:[#allocation6 + $0x90] sm:$0xff] }
  0x13   :  { %634 = vmatpush.bf16.msra.mxu3 %v1040_v7  ;;  %v1037_v20 = vld [vmem:[#allocation6 + $0xd8] sm:$0xff]  ;;  %v1036_v24 = vld [vmem:[#allocation6 + $0xd0] sm:$0xff]  ;;  %v1011_v25 = vld [vmem:[#allocation6 + $0x8] sm:$0xff] }
  0x14   :  { %596 = vmatpush.bf16.msra.mxu0 %v1015_v8  ;;  %v1019_v26 = vld [vmem:[#allocation6 + $0x48] sm:$0xff]  ;;  %v51_v29 = vld [vmem:[#allocation3 + $0x8] sm:$0xff]  ;;  %v1010_v30 = vld [vmem:[#allocation6] sm:$0xff] }
  0x15   :  { %609 = vmatpush.bf16.msra.mxu1 %v1023_v9  ;;  %v1027_v27 = vld [vmem:[#allocation6 + $0x88] sm:$0xff]  ;;  %v1018_v31 = vld [vmem:[#allocation6 + $0x40] sm:$0xff]  ;;  %57 = vst [vmem:[#allocation1 + $0x20] ss:$4 sm:$0xff] %v51_v29  ;;  %v1049_v34 = vld [vmem:[#allocation6 + $0x138] sm:$0xff] }
  0x16   :  { %622 = vmatpush.bf16.msra.mxu2 %v1031_v10  ;;  %v1035_v28 = vld [vmem:[#allocation6 + $0xc8] sm:$0xff]  ;;  %v1026_v32 = vld [vmem:[#allocation6 + $0x80] sm:$0xff]  ;;  %v1057_v35 = vld [vmem:[#allocation6 + $0x178] sm:$0xff] }
  0x17   :  { %635 = vmatpush.bf16.msra.mxu3 %v1039_v11  ;;  %v1034_v33 = vld [vmem:[#allocation6 + $0xc0] sm:$0xff]  ;;  %v60_v36 = vld.sshfl [vmem:[#allocation1 + $0x10] sm:$0xff pattern:$0x73625140]  ;;  %v1047_v50 = vld [vmem:[#allocation6 + $0x128] sm:$0xff] }
  0x18   :  { %597 = vmatpush.bf16.msra.mxu0 %v1014_v12  ;;  %v58_v37 = vld.sshfl [vmem:[#allocation1] sm:$0xff pattern:$0x73625140]  ;;  %v61_v38 = vld.sshfl [vmem:[#allocation1 + $0x18] sm:$0xff pattern:$0x73625140]  ;;  %v76_v42 = vpack.c.bf16 %v60_v36, %v60_v36 }
  0x19   :  { %610 = vmatpush.bf16.msra.mxu1 %v1022_v13  ;;  %v59_v39 = vld.sshfl [vmem:[#allocation1 + $0x8] sm:$0xff pattern:$0x73625140]  ;;  %v1065_v40 = vld [vmem:[#allocation6 + $0x1b8] sm:$0xff]  ;;  %v74_v43 = vpack.c.bf16 %v58_v37, %v58_v37  ;;  %v77_v44 = vpack.c.bf16 %v61_v38, %v61_v38  ;;  %v1046_v54 = vld [vmem:[#allocation6 + $0x120] sm:$0xff] }
  0x1a   :  { %623 = vmatpush.bf16.msra.mxu2 %v1030_v14  ;;  %v1073_v41 = vld [vmem:[#allocation6 + $0x1f8] sm:$0xff]  ;;  %v75_v45 = vpack.c.bf16 %v59_v39, %v59_v39  ;;  %v1048_v46 = vld [vmem:[#allocation6 + $0x130] sm:$0xff]  ;;  %v1055_v51 = vld [vmem:[#allocation6 + $0x168] sm:$0xff] }
  0x1b   :  { %636 = vmatpush.bf16.msra.mxu3 %v1038_v15  ;;  %v1056_v47 = vld [vmem:[#allocation6 + $0x170] sm:$0xff]  ;;  %v1063_v52 = vld [vmem:[#allocation6 + $0x1a8] sm:$0xff]  ;;  %v1054_v55 = vld [vmem:[#allocation6 + $0x160] sm:$0xff] }
  0x1c   :  { %598 = vmatpush.bf16.msra.mxu0 %v1013_v17  ;;  %v1064_v48 = vld [vmem:[#allocation6 + $0x1b0] sm:$0xff]  ;;  %v1071_v53 = vld [vmem:[#allocation6 + $0x1e8] sm:$0xff]  ;;  %v1062_v56 = vld [vmem:[#allocation6 + $0x1a0] sm:$0xff] }
  0x1d   :  { %611 = vmatpush.bf16.msra.mxu1 %v1021_v18  ;;  %v1072_v49 = vld [vmem:[#allocation6 + $0x1f0] sm:$0xff]  ;;  %v1070_v57 = vld [vmem:[#allocation6 + $0x1e0] sm:$0xff]  ;;  %v1045_v58 = vld [vmem:[#allocation6 + $0x118] sm:$0xff] }
  0x1e   :  { %624 = vmatpush.bf16.msra.mxu2 %v1029_v19  ;;  %v1053_v59 = vld [vmem:[#allocation6 + $0x158] sm:$0xff]  ;;  %v1044_v62 = vld [vmem:[#allocation6 + $0x110] sm:$0xff]  ;;  %v1043_v2 = vld [vmem:[#allocation6 + $0x108] sm:$0xff] }
  0x1f   :  { %637 = vmatpush.bf16.msra.mxu3 %v1037_v20  ;;  %v1061_v60 = vld [vmem:[#allocation6 + $0x198] sm:$0xff]  ;;  %v1052_v63 = vld [vmem:[#allocation6 + $0x150] sm:$0xff]  ;;  %v1051_v3 = vld [vmem:[#allocation6 + $0x148] sm:$0xff]  ;;  %v1167_v20 = vmov 0.0  }
  0x20   :  { %599 = vmatpush.bf16.msra.mxu0 %v1012_v21  ;;  %v1069_v61 = vld [vmem:[#allocation6 + $0x1d8] sm:$0xff]  ;;  %v1060_v0 = vld [vmem:[#allocation6 + $0x190] sm:$0xff]  ;;  %v1059_v4 = vld [vmem:[#allocation6 + $0x188] sm:$0xff]  ;;  %49 = vst [vmem:[#allocation2] sm:$0x3] %v1167_v20 }
  0x21   :  { %612 = vmatpush.bf16.msra.mxu1 %v1020_v22  ;;  %v1068_v1 = vld [vmem:[#allocation6 + $0x1d0] sm:$0xff]  ;;  %v1067_v5 = vld [vmem:[#allocation6 + $0x1c8] sm:$0xff]  ;;  %v1042_v6 = vld [vmem:[#allocation6 + $0x100] sm:$0xff] }
  0x22   :  { %625 = vmatpush.bf16.msra.mxu2 %v1028_v23  ;;  %v1050_v7 = vld [vmem:[#allocation6 + $0x140] sm:$0xff]  ;;  %v63_v11 = vld.sshfl [vmem:[#allocation1 + $0x28] sm:$0xff pattern:$0x73625140] }
  0x23   :  { %638 = vmatpush.bf16.msra.mxu3 %v1036_v24  ;;  %v1058_v8 = vld [vmem:[#allocation6 + $0x180] sm:$0xff]  ;;  %v64_v12 = vld.sshfl [vmem:[#allocation1 + $0x30] sm:$0xff pattern:$0x73625140]  ;;  %v79_v15 = vpack.c.bf16 %v63_v11, %v63_v11 }
  0x24   :  { %600 = vmatpush.bf16.msra.mxu0 %v1011_v25  ;;  %v1066_v9 = vld [vmem:[#allocation6 + $0x1c0] sm:$0xff]  ;;  %v80_v16 = vpack.c.bf16 %v64_v12, %v64_v12 }
  0x25   :  { %613 = vmatpush.bf16.msra.mxu1 %v1019_v26  ;;  %v62_v10 = vld.sshfl [vmem:[#allocation1 + $0x20] sm:$0xff pattern:$0x73625140]  ;;  %v65_v13 = vld.sshfl [vmem:[#allocation1 + $0x38] sm:$0xff pattern:$0x73625140] }
  0x26   :  { %626 = vmatpush.bf16.msra.mxu2 %v1027_v27  ;;  %v78_v14 = vpack.c.bf16 %v62_v10, %v62_v10  ;;  %v81_v17 = vpack.c.bf16 %v65_v13, %v65_v13 }
  0x27   :  { %639 = vmatpush.bf16.msra.mxu3 %v1035_v28  ;;  %v52_v39 = vld [vmem:[#allocation2] sm:$0x3] }
  0x28   :  { %601 = vmatpush.bf16.msra.mxu0 %v1010_v30 }
  0x29   :  { %614 = vmatpush.bf16.msra.mxu1 %v1018_v31 }
  0x2a   :  { %627 = vmatpush.bf16.msra.mxu2 %v1026_v32 }
  0x2b   :  { %640 = vmatpush.bf16.msra.mxu3 %v1034_v33  ;;  %602 = vmatmul.bf16.vlgmr.msra.gmra.mxu0 %v74_v43 }
  0x2c   :  { %646 = vmatpush.bf16.msrb.mxu0 %v1049_v34  ;;  %615 = vmatmul.bf16.vlgmr.msra.gmra.mxu1 %v75_v45 }
  0x2d   :  { %659 = vmatpush.bf16.msrb.mxu1 %v1057_v35  ;;  %628 = vmatmul.bf16.vlgmr.msra.gmra.mxu2 %v76_v42 }
  0x2e   :  { %672 = vmatpush.bf16.msrb.mxu2 %v1065_v40  ;;  %641 = vmatmul.bf16.vlgmr.msra.gmra.mxu3 %v77_v44  ;;  %v1080_v44 = vld [vmem:[%s1203_s2] ss:$0 sm:$0xff]  ;;  %s1168_s2 = smov [#allocation8]  }
  0x2f   :  { %685 = vmatpush.bf16.msrb.mxu3 %v1073_v41  ;;  %s741_s24 = sshll.u32 %s1168_s2, 4  ;;  %s742_s24 = int_to_ptr.vmem [resolvable:$true] %s741_s24 }
  0x30   :  { %647 = vmatpush.bf16.msrb.mxu0 %v1048_v46 }
  0x31   :  { %660 = vmatpush.bf16.msrb.mxu1 %v1056_v47 }
  0x32   :  { %673 = vmatpush.bf16.msrb.mxu2 %v1064_v48 }
  0x33   :  { %686 = vmatpush.bf16.msrb.mxu3 %v1072_v49 }
  0x34   :  { %648 = vmatpush.bf16.msrb.mxu0 %v1047_v50 }
  0x35   :  { %661 = vmatpush.bf16.msrb.mxu1 %v1055_v51 }
  0x36   :  { %674 = vmatpush.bf16.msrb.mxu2 %v1063_v52 }
  0x37   :  { %687 = vmatpush.bf16.msrb.mxu3 %v1071_v53 }
  0x38   :  { %649 = vmatpush.bf16.msrb.mxu0 %v1046_v54 }
  0x39   :  { %662 = vmatpush.bf16.msrb.mxu1 %v1054_v55 }
  0x3a   :  { %675 = vmatpush.bf16.msrb.mxu2 %v1062_v56 }
  0x3b   :  { %688 = vmatpush.bf16.msrb.mxu3 %v1070_v57 }
  0x3c   :  { %650 = vmatpush.bf16.msrb.mxu0 %v1045_v58 }
  0x3d   :  { %663 = vmatpush.bf16.msrb.mxu1 %v1053_v59 }
  0x3e   :  { %676 = vmatpush.bf16.msrb.mxu2 %v1061_v60 }
  0x3f   :  { %689 = vmatpush.bf16.msrb.mxu3 %v1069_v61 }
  0x40   :  { %651 = vmatpush.bf16.msrb.mxu0 %v1044_v62 }
  0x41   :  { %664 = vmatpush.bf16.msrb.mxu1 %v1052_v63 }
  0x42   :  { %677 = vmatpush.bf16.msrb.mxu2 %v1060_v0 }
  0x43   :  { %690 = vmatpush.bf16.msrb.mxu3 %v1068_v1 }
  0x44   :  { %652 = vmatpush.bf16.msrb.mxu0 %v1043_v2 }
  0x45   :  { %665 = vmatpush.bf16.msrb.mxu1 %v1051_v3 }
  0x46   :  { %678 = vmatpush.bf16.msrb.mxu2 %v1059_v4 }
  0x47   :  { %691 = vmatpush.bf16.msrb.mxu3 %v1067_v5 }
  0x48   :  { %653 = vmatpush.bf16.msrb.mxu0 %v1042_v6 }
  0x49   :  { %666 = vmatpush.bf16.msrb.mxu1 %v1050_v7 }
  0x4a   :  { %679 = vmatpush.bf16.msrb.mxu2 %v1058_v8 }
  0x4b   :  { %692 = vmatpush.bf16.msrb.mxu3 %v1066_v9  ;;  %654 = vmatmul.bf16.vlgmr.msrb.gmra.mxu0 %v78_v14 }
  0x4c   :  { %667 = vmatmul.bf16.vlgmr.msrb.gmra.mxu1 %v79_v15 }
  0x4d   :  { %680 = vmatmul.bf16.vlgmr.msrb.gmra.mxu2 %v80_v16 }
  0x4e   :  { %693 = vmatmul.bf16.vlgmr.msrb.gmra.mxu3 %v81_v17 }
  0xa8   :  { %v603_v18 = vpop.f32.mrf.mxu0 }
  0xa9   :  { %v616_v19 = vpop.f32.mrf.mxu1 }
  0xaa   :  { %v617_v27 = vadd.f32 %v616_v19, %v603_v18 }
  0xb0   :  { %v629_v21 = vpop.f32.mrf.mxu2  ;;  %v605_v23 = vpop.f32.mrf.mxu0 }
  0xb1   :  { %v642_v22 = vpop.f32.mrf.mxu3  ;;  %v618_v24 = vpop.f32.mrf.mxu1  ;;  %v630_v28 = vadd.f32 %v629_v21, %v617_v27 }
  0xb3   :  { %v643_v29 = vadd.f32 %v642_v22, %v630_v28 }
  0xb8   :  { %v631_v25 = vpop.f32.mrf.mxu2 }
  0xb9   :  { %v644_v26 = vpop.f32.mrf.mxu3 }
  0xc8   :  { %v655_v30 = vpop.f32.mrf.mxu0 }
  0xc9   :  { %v668_v31 = vpop.f32.mrf.mxu1  ;;  %v656_v32 = vadd.f32 %v655_v30, %v643_v29 }
  0xcb   :  { %v669_v33 = vadd.f32 %v668_v31, %v656_v32 }
  0xd0   :  { %v681_v34 = vpop.f32.mrf.mxu2  ;;  %v657_v37 = vpop.f32.mrf.mxu0 }
  0xd1   :  { %v694_v35 = vpop.f32.mrf.mxu3  ;;  %v682_v36 = vadd.f32 %v681_v34, %v669_v33  ;;  %v670_v38 = vpop.f32.mrf.mxu1 }
  0xd3   :  { %v695_v40 = vadd.f32 %v694_v35, %v682_v36 }
  0xd5   :  { %v698_v41 = vadd.f32 %v695_v40, %v52_v39 }
  0xd7   :  { %699 = vst [vmem:[#allocation2] sm:$0x3] %v698_v41 }
  0xd8   :  { %v683_v42 = vpop.f32.mrf.mxu2 }
  0xd9   :  { %v696_v43 = vpop.f32.mrf.mxu3 }
  0xde   :  { %v703_v45 = vld [vmem:[#allocation2] sm:$0x3] }
  0xdf   :  { %v708_v46 = vadd.f32 %v1080_v44, %v703_v45 }
  0xe1   :  { %v710_v47 = vsel %vm709_vm0, %v708_v46, -inf }
  0xe2   :  { %711 = vmax.xlane.f32.xlu0 %v710_v47 }
 0x155   :  { %v712_v48 = vpop.xlane.xlu0 %711 }
 0x156   :  { %v713_v49 = vsub.f32 %v708_v46, %v712_v48 }
 0x158   :  { %v714_v50 = vmul.f32 1.442695, %v713_v49 }
 0x15a   :  { %1081 = vpow2.f32 %v714_v50 }
 0x160   :  { %v1082_v51 = vpop.eup %1081 }
 0x161   :  { %v716_v52 = vsel %vm709_vm0, %v1082_v51, 0.0 }
 0x162   :  { %717 = vadd.xlane.f32.xlu0 %v716_v52 }
 0x1d5   :  { %v718_v53 = vpop.xlane.xlu0 %717 }
 0x1d6   :  { %1083 = vrcp.f32 %v718_v53  ;;  %v730_v57 = vand.u32 2147483648, %v718_v53  ;;  %v728_v59 = vand.u32 2147483647, %v718_v53  ;;  %vm724_vm2 = vweird.f32 %v718_v53 }
 0x1d8   :  { %v731_v61 = vor.u32 1.1754944e-38, %v730_v57  ;;  %vm729_vm4 = vcmp.eq.f32.partialorder %v728_v59, 8.507059e+37 }
 0x1dc   :  { %v1084_v54 = vpop.eup %1083 }
 0x1dd   :  { %v720_v55 = vmul.f32 %v1084_v54, %v718_v53  ;;  %vm725_vm1 = vweird.f32 %v1084_v54 }
 0x1de   :  { %vm726_vm3 = vmor %vm724_vm2, %vm725_vm1 }
 0x1df   :  { %v721_v56 = vsub.f32 1.0, %v720_v55 }
 0x1e1   :  { %v722_v58 = vmul.f32 %v1084_v54, %v721_v56 }
 0x1e3   :  { %v723_v60 = vadd.f32 %v1084_v54, %v722_v58 }
 0x1e5   :  { %v727_v62 = vsel %vm726_vm3, %v1084_v54, %v723_v60 }
 0x1e6   :  { %v732_v63 = vsel %vm729_vm4, %v731_v61, %v727_v62 }
 0x1e7   :  { %v734_v0 = vmul.f32 %v1082_v51, %v732_v63 }
 0x1e9   :  { %735 = vst [vmem:[#allocation8] sm:$0x3] %v734_v0 }
 0x1ea   :  { %746 = dma.vmem_to_hbm [thread:$0]  %s742_s24, 32, %s744_s27, [#allocation5]  }
 0x1eb   :  { %1161 = dma.done.wait [#allocation5], 32  }
 0x1ec   :  { %1162 = vsyncadd [#allocation5], 4294967264 }
 0x1ed   :  { %751 = vsyncpa [#allocation4], 1 }
 0x1ee   :  { %752 = vsyncpa [#allocation7], 1 }
 0x1ef   :  { %753 = vsyncpa [#allocation5], 1 }

</bundles_post_ra>
